<compile_context>
chip_gen: v7x
topology: tpu7x:2x2x1
jax: 0.10.0
libtpu: 0.0.40
codegen_flags: <defaults>
</compile_context>

<pallas_src>
import functools
import math

import jax
import jax.numpy as jnp
from jax.experimental import pallas as pl
from jax.experimental.pallas import tpu as pltpu

_LANES = 128
_MIB = 1024 * 1024
# f32 (tr, hidden) intermediates live inside the kernel: d = x - u, the pre-cast
# epilogue result, plus slack for the transient reduction upcast.
_K_F32_TEMPS = 3


def _cdiv(a: int, b: int) -> int:
    return -(-a // b)


def _round_up(a: int, b: int) -> int:
    return _cdiv(a, b) * b


def _sublane_multiple(dtype) -> int:
    # vreg sublane packing: 8 rows for 32-bit, 16 for 16-bit, 32 for 8-bit.
    itemsize = jnp.dtype(dtype).itemsize
    return 8 * max(1, 4 // max(1, itemsize))


def _tpu_info():
    """Return (vmem_capacity_bytes, tensorcores_per_chip) with safe fallbacks."""
    kind = ""
    try:
        kind = jax.devices()[0].device_kind.lower()
    except Exception:
        pass
    is_v7 = ("v7" in kind) or ("7x" in kind)
    # Chips whose two TensorCores share HBM and split a "parallel" grid axis.
    megacore = (
        is_v7
        or ("v4" in kind)
        or ("v5p" in kind)
        or ("v5" in kind and "lite" not in kind and "5e" not in kind)
    )
    num_cores = 2 if megacore else 1

    vmem_bytes = None
    try:
        info = pltpu.get_tpu_info()
        vmem_bytes = getattr(info, "vmem_capacity_bytes", None)
    except Exception:
        pass
    if not vmem_bytes:
        vmem_bytes = 64 * _MIB if is_v7 else 128 * _MIB
    return int(vmem_bytes), int(num_cores)


def _layernorm_kernel(x_ref, gamma_ref, beta_ref, o_ref, *, eps, inv_h, pad_frac):
    # Pass 1: row mean.  The f32 upcast feeding this reduction is transient;
    # only the (tr, 1) mean carries to the next phase.
    u = jnp.sum(x_ref[...].astype(jnp.float32), axis=-1, keepdims=True) * inv_h
    # Pass 2: re-read / re-upcast x from the resident VMEM input buffer (cheap
    # VPU work; avoids keeping a second (tr, hidden) f32 copy live).
    d = x_ref[...].astype(jnp.float32) - u
    # Biased variance.  Zero-padded lanes each contribute u^2 to sum(d*d);
    # pad_frac = n_pad / hidden removes that exactly (0.0 when unpadded).
    s = jnp.sum(d * d, axis=-1, keepdims=True) * inv_h - pad_frac * (u * u)
    inv_std = jax.lax.rsqrt(jnp.maximum(s, 0.0) + eps)   # eps inside the sqrt; EUP rsqrt
    g = gamma_ref[...].astype(jnp.float32)
    b = beta_ref[...].astype(jnp.float32)
    o_ref[...] = (d * inv_std * g + b).astype(o_ref.dtype)  # one lane-dense tile store


def bert_layer_norm(x, gamma, beta, variance_epsilon=1e-12, row_tile=1024):
    """TF-style LayerNorm over the last axis.  x: (..., hidden); gamma/beta: (hidden,)."""
    orig_shape = x.shape
    hidden = orig_shape[-1]
    rows = math.prod(orig_shape[:-1]) if len(orig_shape) > 1 else 1
    if rows == 0 or hidden == 0:
        return x
    x2 = x.reshape(rows, hidden)

    # Lane-dense stores: pad hidden up to a 128-lane multiple (no-op for BERT's
    # 768/1024).  Zero padding keeps the row sum exact; the squared sum gets an
    # exact correction inside the kernel; pad lanes are sliced off afterwards.
    hidden_p = _round_up(hidden, _LANES)
    pad = hidden_p - hidden
    if pad:
        x2 = jnp.pad(x2, ((0, 0), (0, pad)))
        gamma2 = jnp.pad(gamma.reshape(1, hidden), ((0, 0), (0, pad)))
        beta2 = jnp.pad(beta.reshape(1, hidden), ((0, 0), (0, pad)))
    else:
        gamma2 = gamma.reshape(1, hidden)
        beta2 = beta.reshape(1, hidden)

    sublane = _sublane_multiple(x.dtype)
    itemsize = jnp.dtype(x.dtype).itemsize

    vmem_capacity, num_cores = _tpu_info()
    # Generation-aware VMEM limit: 48 MiB on v5e/v6e (128 MiB physical), ~52 MiB
    # on v7x leaving headroom under the 64 MiB per-TensorCore physical VMEM.
    if vmem_capacity >= 96 * _MIB:
        vmem_limit = 48 * _MIB
    else:
        vmem_limit = max(16 * _MIB, min(52 * _MIB, vmem_capacity - 12 * _MIB))
    # Budget for tile sizing: limit minus headroom for gamma/beta buffers,
    # semaphores and compiler-internal scratch.
    vmem_budget = max(4 * _MIB, vmem_limit - 8 * _MIB)

    # Per-row VMEM cost: double-buffered input + output tiles (2 * 2) plus the
    # in-kernel f32 (tr, hidden) intermediates.
    per_row_bytes = 4 * hidden_p * itemsize + _K_F32_TEMPS * hidden_p * 4
    max_rows_by_vmem = max(sublane, vmem_budget // per_row_bytes)
    tr = min(row_tile, max_rows_by_vmem)
    tr = max(sublane, (tr // sublane) * sublane)        # multiple of sublane packing

    rows_ceil = _round_up(rows, sublane)
    tr = min(tr, rows_ceil)

    n_blocks = _cdiv(rows, tr)                          # last block may be partial
    # Megacore split: only chips with 2 TensorCores benefit; keep the block
    # count a balanced multiple of the core count (never grows tr past the cap).
    if num_cores >= 2 and rows_ceil >= num_cores * sublane:
        target = max(num_cores, _round_up(n_blocks, num_cores))
        tr = max(sublane, _round_up(_cdiv(rows_ceil, target), sublane))
        n_blocks = _cdiv(rows, tr)

    kernel = functools.partial(
        _layernorm_kernel,
        eps=float(variance_epsilon),
        inv_h=1.0 / hidden,
        pad_frac=pad / hidden,
    )

    out = pl.pallas_call(
        kernel,
        out_shape=jax.ShapeDtypeStruct((rows, hidden_p), x.dtype),
        grid_spec=pltpu.PrefetchScalarGridSpec(
            num_scalar_prefetch=0,
            grid=(n_blocks,),
            in_specs=[
                pl.BlockSpec((tr, hidden_p), lambda i: (i, 0)),
                pl.BlockSpec((1, hidden_p), lambda i: (0, 0)),
                pl.BlockSpec((1, hidden_p), lambda i: (0, 0)),
            ],
            out_specs=pl.BlockSpec((tr, hidden_p), lambda i: (i, 0)),
        ),
        compiler_params=pltpu.CompilerParams(
            dimension_semantics=("parallel",),
            vmem_limit_bytes=int(vmem_limit),
        ),
    )(x2, gamma2, beta2)

    if pad:
        out = out[:, :hidden]
    return out.reshape(orig_shape)


if __name__ == "__main__":
    # Small shapes consistent with the module: batch=2, seq=8, hidden=32.
    batch, seq, hidden = 2, 8, 32
    key = jax.random.PRNGKey(0)
    x = jax.random.normal(key, (batch, seq, hidden), dtype=jnp.float32)

    # Deterministic parameter init, matching nn.Parameter(ones)/(zeros).
    gamma = jnp.ones((hidden,), dtype=jnp.float32)
    beta = jnp.zeros((hidden,), dtype=jnp.float32)

    out = bert_layer_norm(x, gamma, beta, variance_epsilon=1e-12)
    out = jax.block_until_ready(out)

    # Reference check in plain JAX (same math as the PyTorch forward).
    u = jnp.mean(x, axis=-1, keepdims=True)
    s = jnp.mean((x - u) ** 2, axis=-1, keepdims=True)
    ref = gamma * ((x - u) / jnp.sqrt(s + 1e-12)) + beta
    assert jnp.allclose(out, ref, atol=1e-5, rtol=1e-5), "mismatch vs reference"

    print("KERNEL_OK")
</pallas_src>

<mosaic_0001>
module attributes {stable_mosaic.version = 11 : i64} {
  func.func @_layernorm_kernel(%arg0: i32, %arg1: memref<16x128xf32, #tpu.memory_space<vmem>>, %arg2: memref<1x128xf32, #tpu.memory_space<vmem>>, %arg3: memref<1x128xf32, #tpu.memory_space<vmem>>, %arg4: memref<16x128xf32, #tpu.memory_space<vmem>>) attributes {dimension_semantics = [#tpu.dimension_semantics<parallel>], iteration_bounds = array<i64: 1>, scalar_prefetch = 0 : i64, scratch_operands = 0 : i64, tpu.core_type = #tpu.core_type<tc>, window_params = [{transform_indices = @transform_0, window_bounds = array<i64: 16, 128>}, {pipeline_mode = #tpu.pipeline_mode<synchronous>, transform_indices = @transform_1, window_bounds = array<i64: 1, 128>}, {pipeline_mode = #tpu.pipeline_mode<synchronous>, transform_indices = @transform_2, window_bounds = array<i64: 1, 128>}, {transform_indices = @transform_3, window_bounds = array<i64: 16, 128>}]} {
    %c0 = arith.constant 0 : index
    %c0_0 = arith.constant 0 : index
    %0 = vector.load %arg1[%c0, %c0_0] : memref<16x128xf32, #tpu.memory_space<vmem>>, vector<16x128xf32>
    %cst = arith.constant dense<0.000000e+00> : vector<16xf32>
    %1 = vector.multi_reduction <add>, %0, %cst [1] : vector<16x128xf32> to vector<16xf32>
    %2 = vector.shape_cast %1 : vector<16xf32> to vector<16x1xf32>
    %cst_1 = arith.constant 3.125000e-02 : f32
    %3 = vector.broadcast %cst_1 : f32 to vector<16x1xf32>
    %4 = arith.mulf %2, %3 : vector<16x1xf32>
    %c0_2 = arith.constant 0 : index
    %c0_3 = arith.constant 0 : index
    %5 = vector.load %arg1[%c0_2, %c0_3] : memref<16x128xf32, #tpu.memory_space<vmem>>, vector<16x128xf32>
    %6 = vector.broadcast %4 : vector<16x1xf32> to vector<16x128xf32>
    %7 = arith.subf %5, %6 : vector<16x128xf32>
    %8 = arith.mulf %7, %7 : vector<16x128xf32>
    %cst_4 = arith.constant dense<0.000000e+00> : vector<16xf32>
    %9 = vector.multi_reduction <add>, %8, %cst_4 [1] : vector<16x128xf32> to vector<16xf32>
    %10 = vector.shape_cast %9 : vector<16xf32> to vector<16x1xf32>
    %cst_5 = arith.constant 3.125000e-02 : f32
    %11 = vector.broadcast %cst_5 : f32 to vector<16x1xf32>
    %12 = arith.mulf %10, %11 : vector<16x1xf32>
    %13 = arith.mulf %4, %4 : vector<16x1xf32>
    %cst_6 = arith.constant 3.000000e+00 : f32
    %14 = vector.broadcast %cst_6 : f32 to vector<16x1xf32>
    %15 = arith.mulf %14, %13 : vector<16x1xf32>
    %16 = arith.subf %12, %15 : vector<16x1xf32>
    %cst_7 = arith.constant 0.000000e+00 : f32
    %17 = vector.broadcast %cst_7 : f32 to vector<16x1xf32>
    %18 = arith.maximumf %16, %17 : vector<16x1xf32>
    %cst_8 = arith.constant 9.99999996E-13 : f32
    %19 = vector.broadcast %cst_8 : f32 to vector<16x1xf32>
    %20 = arith.addf %18, %19 : vector<16x1xf32>
    %21 = math.rsqrt %20 : vector<16x1xf32>
    %c0_9 = arith.constant 0 : index
    %c0_10 = arith.constant 0 : index
    %22 = vector.load %arg2[%c0_9, %c0_10] : memref<1x128xf32, #tpu.memory_space<vmem>>, vector<1x128xf32>
    %c0_11 = arith.constant 0 : index
    %c0_12 = arith.constant 0 : index
    %23 = vector.load %arg3[%c0_11, %c0_12] : memref<1x128xf32, #tpu.memory_space<vmem>>, vector<1x128xf32>
    %24 = vector.broadcast %21 : vector<16x1xf32> to vector<16x128xf32>
    %25 = arith.mulf %7, %24 : vector<16x128xf32>
    %26 = vector.broadcast %22 : vector<1x128xf32> to vector<16x128xf32>
    %27 = arith.mulf %25, %26 : vector<16x128xf32>
    %28 = vector.broadcast %23 : vector<1x128xf32> to vector<16x128xf32>
    %29 = arith.addf %27, %28 : vector<16x128xf32>
    %c0_13 = arith.constant 0 : index
    %c0_14 = arith.constant 0 : index
    %30 = vector.load %arg4[%c0_13, %c0_14] : memref<16x128xf32, #tpu.memory_space<vmem>>, vector<16x128xf32>
    tpu.vector_store %arg4[%c0_13, %c0_14], %29 {strides = array<i32>} : memref<16x128xf32, #tpu.memory_space<vmem>>, vector<16x128xf32>,
    return
  }
  func.func @transform_0(%arg0: i32) -> (i32, i32) {
    %c0_i32 = arith.constant 0 : i32
    %c0_i32_0 = arith.constant 0 : i32
    return %arg0, %c0_i32 : i32, i32
  }
  func.func @transform_1(%arg0: i32) -> (i32, i32) {
    %c0_i32 = arith.constant 0 : i32
    %c0_i32_0 = arith.constant 0 : i32
    %c0_i32_1 = arith.constant 0 : i32
    return %c0_i32, %c0_i32_0 : i32, i32
  }
  func.func @transform_2(%arg0: i32) -> (i32, i32) {
    %c0_i32 = arith.constant 0 : i32
    %c0_i32_0 = arith.constant 0 : i32
    %c0_i32_1 = arith.constant 0 : i32
    return %c0_i32, %c0_i32_0 : i32, i32
  }
  func.func @transform_3(%arg0: i32) -> (i32, i32) {
    %c0_i32 = arith.constant 0 : i32
    %c0_i32_0 = arith.constant 0 : i32
    return %arg0, %c0_i32 : i32, i32
  }
}

</mosaic_0001>

<bundles_post_ra>
// kernel: tpu_custom_call.1
= control target key start
LH: loop header
LB: loop body
LE: loop exit
PB: predicated region body
PF: predicated region fallthrough
CT: control target
= control target key end

     0   :  { %8 = vsyncpa [#allocation3], 0  ;;  %s216_s0 = inlined_call_operand.hbm [shape: f32[16,128], index: 0, kind: input, shape index: {}]   ;;  %s217_s1 = inlined_call_operand.vmem [shape: f32[1,128], index: 1, kind: input, shape index: {}]   ;;  %s218_s2 = inlined_call_operand.vmem [shape: f32[1,128], index: 2, kind: input, shape index: {}]   ;;  %s219_s3 = inlined_call_operand.hbm [shape: f32[16,128], index: 3, kind: output, shape index: {}]  }
   0x1   :  { %9 = vsyncpa [#allocation4], 0  ;;  %s156_s12 = smov [#allocation2]   ;;  %s108_s16 = scalar_lea.hbm %s216_s0, 256 }
   0x2   :  { %s15_s13 = sshll.u32 %s156_s12, 4  ;;  %p109_p0 = scmp.ne.s32.totalorder %s216_s0, %s108_s16  ;;  %s16_s13 = int_to_ptr.vmem [resolvable:$true] %s15_s13 }
   0x3   :  { %p112_p1 = scmp.lt.u32.totalorder %s108_s16, %s216_s0 }
   0x5   :  { %p114_p2 = pnand %p112_p1, %p109_p0 }
   0x7   :  { %117 = shalt.err (!%p114_p2)
}
   0x8   :  { %s118_s21 = scalar_lea.vmem %s16_s13, 256  ;;  %p123_p4 = scmp.lt.s32.totalorder %s16_s13, %s16_s13 }
   0x9   :  { %p119_p3 = scmp.ne.s32.totalorder %s16_s13, %s118_s21  ;;  %p124_p5 = scmp.lt.s32.totalorder %s118_s21, %s118_s21 }
   0xb   :  { %p125_p6 = por %p124_p5, %p123_p4 }
   0xd   :  { %p126_p7 = pnand %p125_p6, %p119_p3 }
   0xf   :  { %129 = shalt.err (!%p126_p7)
}
  0x10   :  { %s157_s22 = smov 128   ;;  %s158_s23 = smov 8  }
  0x11   :  { %21 = dma.hbm_to_vmem [thread:$0]  %s216_s0, 256, %s16_s13, [#allocation3], %s157_s22, %s157_s22, %s158_s23  }
  0x12   :  { %152 = dma.done.wait [#allocation3], 256  }
  0x13   :  { %153 = vsyncadd [#allocation3], 4294967040  ;;  %v29_v0 = vld [vmem:[#allocation2] sm:$0xff]  ;;  %v30_v1 = vld [vmem:[#allocation2 + $0x8] sm:$0xff]  ;;  %s159_s29 = smov [#allocation5]  }
  0x14   :  { %31 = vadd.xlane.f32.xlu0 %v29_v0  ;;  %v98_v25 = vld [vmem:[%s217_s1] ss:$0 sm:$0xff]  ;;  %s86_s30 = sshll.u32 %s159_s29, 4  ;;  %s87_s30 = int_to_ptr.vmem [resolvable:$true] %s86_s30 }
  0x15   :  { %v99_v27 = vld [vmem:[%s218_s2] ss:$0 sm:$0xff]  ;;  %s130_s4 = scalar_lea.vmem %s87_s30, 256  ;;  %p135_p9 = scmp.lt.s32.totalorder %s87_s30, %s87_s30 }
  0x16   :  { %p131_p8 = scmp.ne.s32.totalorder %s87_s30, %s130_s4  ;;  %p136_p10 = scmp.lt.s32.totalorder %s130_s4, %s130_s4 }
  0x18   :  { %33 = vadd.xlane.f32.xlu0 %v30_v1  ;;  %p137_p11 = por %p136_p10, %p135_p9 }
  0x1a   :  { %p138_p12 = pnand %p137_p11, %p131_p8 }
  0xa1   :  { %v32_v2 = vpop.xlane.xlu0 %31 }
  0xa2   :  { %v35_v3 = vmul.f32 0.03125, %v32_v2 }
  0xa4   :  { %v37_v4 = vsub.f32 %v29_v0, %v35_v3  ;;  %v47_v10 = vmul.f32 %v35_v3, %v35_v3 }
  0xa5   :  { %v34_v5 = vpop.xlane.xlu0 %33 }
  0xa6   :  { %v36_v6 = vmul.f32 0.03125, %v34_v5  ;;  %v39_v7 = vmul.f32 %v37_v4, %v37_v4  ;;  %v49_v12 = vmul.f32 3.0, %v47_v10 }
  0xa8   :  { %v38_v8 = vsub.f32 %v30_v1, %v36_v6  ;;  %41 = vadd.xlane.f32.xlu1 %v39_v7  ;;  %v48_v13 = vmul.f32 %v36_v6, %v36_v6 }
  0xaa   :  { %v40_v9 = vmul.f32 %v38_v8, %v38_v8  ;;  %v50_v17 = vmul.f32 3.0, %v48_v13 }
  0xac   :  { %43 = vadd.xlane.f32.xlu1 %v40_v9 }
 0x135   :  { %v42_v11 = vpop.xlane.xlu1 %41 }
 0x136   :  { %v45_v14 = vmul.f32 0.03125, %v42_v11 }
 0x138   :  { %v51_v15 = vsub.f32 %v45_v14, %v49_v12 }
 0x139   :  { %v44_v16 = vpop.xlane.xlu1 %43 }
 0x13a   :  { %v53_v18 = vmax.f32 %v51_v15, 0.0  ;;  %v46_v19 = vmul.f32 0.03125, %v44_v16 }
 0x13c   :  { %v55_v20 = vadd.f32 1e-12, %v53_v18  ;;  %v52_v21 = vsub.f32 %v46_v19, %v50_v17 }
 0x13e   :  { %104 = vrsqrt.f32 %v55_v20  ;;  %v54_v22 = vmax.f32 %v52_v21, 0.0 }
 0x140   :  { %v56_v23 = vadd.f32 1e-12, %v54_v22 }
 0x142   :  { %106 = vrsqrt.f32 %v56_v23 }
 0x148   :  { %v105_v24 = vpop.eup %104 }
 0x149   :  { %v61_v26 = vmul.f32 %v105_v24, %v37_v4 }
 0x14b   :  { %v69_v28 = vmul.f32 %v98_v25, %v61_v26 }
 0x14c   :  { %v107_v29 = vpop.eup %106 }
 0x14d   :  { %v62_v30 = vmul.f32 %v107_v29, %v38_v8  ;;  %v77_v31 = vadd.f32 %v99_v27, %v69_v28 }
 0x14f   :  { %v70_v32 = vmul.f32 %v98_v25, %v62_v30  ;;  %79 = vst [vmem:[#allocation5] sm:$0xff] %v77_v31 }
 0x151   :  { %v78_v33 = vadd.f32 %v99_v27, %v70_v32 }
 0x153   :  { %80 = vst [vmem:[#allocation5 + $0x8] sm:$0xff] %v78_v33 }
 0x154   :  { %141 = shalt.err (!%p138_p12)
}
 0x155   :  { %s142_s5 = scalar_lea.hbm %s219_s3, 256 }
 0x156   :  { %p143_p13 = scmp.ne.s32.totalorder %s219_s3, %s142_s5  ;;  %p146_p0 = scmp.lt.u32.totalorder %s142_s5, %s219_s3 }
 0x158   :  { %p148_p1 = pnand %p146_p0, %p143_p13 }
 0x15a   :  { %151 = shalt.err (!%p148_p1)
}
 0x15b   :  { %92 = dma.vmem_to_hbm [thread:$0]  %s87_s30, 256, %s219_s3, [#allocation4], %s157_s22, %s157_s22, %s158_s23  }
 0x15c   :  { %154 = dma.done.wait [#allocation4], 256  }
 0x15d   :  { %155 = vsyncadd [#allocation4], 4294967040 }
 0x15e   :  { %96 = vsyncpa [#allocation3], 1 }
 0x15f   :  { %97 = vsyncpa [#allocation4], 1 }

</bundles_post_ra>
